<compile_context>
chip_gen: v6e
topology: v6e:2x2x1
jax: 0.10.0
libtpu: 0.0.40
codegen_flags: <defaults>
</compile_context>

<pallas_src>
import functools

import jax
import jax.numpy as jnp
import numpy as np
from jax.experimental import pallas as pl
from jax.experimental.pallas import tpu as pltpu

_VMEM_LIMIT = 40 * 1024 * 1024   # above v5e's 16 MiB scoped default, < v7x 64 MiB phys
_MAX_TILE = 256                  # MXU-native granularity on v5e/v6e/v7x
# TODO(synk): raise _MAX_TILE to 512 on 128-MiB-VMEM parts via pltpu.get_tpu_info().


def _round_up(x, m):
    return (x + m - 1) // m * m


def _layer_norm(x, gamma, beta, eps):
    """One-pass LayerNorm over the last axis (var = E[x^2] - mu^2)."""
    d = x.shape[-1]
    s1 = jnp.sum(x, axis=-1, keepdims=True)
    s2 = jnp.sum(x * x, axis=-1, keepdims=True)
    mu = s1 * (1.0 / d)
    var = s2 * (1.0 / d) - mu * mu
    return (x - mu) * jax.lax.rsqrt(var + eps) * gamma + beta


# ---------------------------------------------------------------------------
# Kernel A: row-local prep (LayerNorm [+ TinyAttention logits / values / stats])
# ---------------------------------------------------------------------------
def _prep_kernel(z2_ref, gamma_ref, beta_ref, z2n_ref, *, eps):
    z2n_ref[...] = _layer_norm(z2_ref[...], gamma_ref[...], beta_ref[...],
                               eps).astype(z2n_ref.dtype)


def _prep_attn_kernel(z2_ref, gamma_ref, beta_ref, z_ref, wf_ref, bf_ref,
                      z2n_ref, logits_ref, vp_ref, stats_ref,
                      q_scr, k_scr, *, batch, d_z, d_half, d_attn, eps,
                      seq_len, tile):
    B, Dz, dh, da = batch, d_z, d_half, d_attn

    # ---- LayerNorm half -> bf16 RHS for the gating matmul ----
    z2n_ref[...] = _layer_norm(z2_ref[...], gamma_ref[...], beta_ref[...],
                               eps).astype(z2n_ref.dtype)

    # ---- fused Q | K | (V @ Wproj) projection; q/k land in VMEM scratch ----
    wf = wf_ref[...]
    bf = bf_ref[...]
    for b in range(B):                                    # static tiny batch loop
        zb = z_ref[:, b * Dz:(b + 1) * Dz]                # [tile, Dz] lane slice
        qkv = jnp.dot(zb, wf, preferred_element_type=jnp.float32) + bf
        q_scr[b] = qkv[:, :da]
        k_scr[b] = qkv[:, da:2 * da]
        vp_ref[:, b * dh:(b + 1) * dh] = qkv[:, 2 * da:]

    # ---- scores: lane-dense [tile, B*B] logits block (no concatenates) ----
    scale = 1.0 / float(da) ** 0.5
    for n in range(B):
        for m in range(B):
            col = jnp.sum(q_scr[n] * k_scr[m], axis=-1, keepdims=True) * scale
            logits_ref[:, n * B + m:n * B + m + 1] = col

    # ---- online softmax stats over the sequence axis (sequential grid axis) ----
    lt = logits_ref[...]
    if seq_len % tile != 0:        # statically compiled out when S has no padding
        row = (pl.program_id(0) * tile
               + jax.lax.broadcasted_iota(jnp.int32, lt.shape, 0))
        lt = jnp.where(row < seq_len, lt, -jnp.inf)
    tile_max = jnp.max(lt, axis=0, keepdims=True)

    @pl.when(pl.program_id(0) == 0)
    def _():
        stats_ref[0:1, :] = jnp.full_like(tile_max, -jnp.inf)
        stats_ref[1:2, :] = jnp.zeros_like(tile_max)

    m_old = stats_ref[0:1, :]
    m_new = jnp.maximum(m_old, tile_max)
    stats_ref[1:2, :] = (stats_ref[1:2, :] * jnp.exp(m_old - m_new)
                         + jnp.sum(jnp.exp(lt - m_new), axis=0, keepdims=True))
    stats_ref[0:1, :] = m_new


# ---------------------------------------------------------------------------
# Kernel B: spatial-gating matmul (+ TinyAttention finalize), S-contraction grid
# ---------------------------------------------------------------------------
def _gate_kernel(w_ref, z2n_ref, bias_ref, z1_ref, o_ref, acc_ref):
    @pl.when(pl.program_id(1) == 0)
    def _():
        acc_ref[...] = jnp.zeros_like(acc_ref)

    acc_ref[...] += jnp.dot(w_ref[...], z2n_ref[...],
                            preferred_element_type=jnp.float32)

    @pl.when(pl.program_id(1) == pl.num_programs(1) - 1)
    def _():
        o_ref[...] = (z1_ref[...] * (acc_ref[...] + bias_ref[...])
                      ).astype(o_ref.dtype)


def _gate_attn_kernel(w_ref, z2n_ref, bias_ref, z1_ref, logits_ref, vp_ref,
                      stats_ref, bproj_ref, o_ref, acc_ref, *, batch, d_half):
    B, dh = batch, d_half

    @pl.when(pl.program_id(1) == 0)
    def _():
        acc_ref[...] = jnp.zeros_like(acc_ref)

    # canonical accumulate form -> in-place MRB accumulation on v7x
    acc_ref[...] += jnp.dot(w_ref[...], z2n_ref[...],
                            preferred_element_type=jnp.float32)

    @pl.when(pl.program_id(1) == pl.num_programs(1) - 1)
    def _():
        # finish the dim-0 softmax from the global running max / sum
        a = (jnp.exp(logits_ref[...] - stats_ref[0:1, :])
             * pl.reciprocal(stats_ref[1:2, :], approx=True))        # [tm, B*B]
        vp = vp_ref[...]                                             # [tm, B*dh]
        for n in range(B):                                # static tiny batch loop
            x_n = a[:, n * B:n * B + 1] * vp[:, 0:dh]
            for m in range(1, B):
                x_n = x_n + a[:, n * B + m:n * B + m + 1] * vp[:, m * dh:(m + 1) * dh]
            acc_ref[:, n * dh:(n + 1) * dh] += x_n
        o_ref[...] = (z1_ref[...]
                      * (acc_ref[...] + bias_ref[...] + bproj_ref[...])
                      ).astype(o_ref.dtype)


# ---------------------------------------------------------------------------
# Wrapper
# ---------------------------------------------------------------------------
def spatial_gating_unit(z, params, mask=None, *, tiny_attn=True, eps=1e-5):
    """z: [seq_len, batch, d_z] float32 -> [seq_len, batch, d_z // 2]."""
    S, B, Dz = z.shape
    dh = Dz // 2

    # ---- tiling: square S-tiles, (8,128)/MXU aligned, padded sequence ----
    if S <= _MAX_TILE:
        T = _round_up(S, 8)
    else:
        T = _MAX_TILE
    S_pad = _round_up(S, T)
    n_row = S_pad // T
    pad = S_pad - S

    # ---- wrapper glue: free slices / reshapes / param packing ----
    z1_2d = z[:, :, :dh].reshape(S, B * dh)               # [S, B*dh] lane-dense
    z2_3d = z[:, :, dh:]                                   # [S, B, dh]
    weight = params["weight"][:S, :S]
    if mask is not None:                                   # as in the module
        weight = weight * mask[:, :, 0]
    bias = params["bias"][:S].reshape(S, 1)
    gamma = params["gamma"].reshape(1, 1, dh)
    beta = params["beta"].reshape(1, 1, dh)

    if pad:
        z1_2d = jnp.pad(z1_2d, ((0, pad), (0, 0)))
        z2_3d = jnp.pad(z2_3d, ((0, pad), (0, 0), (0, 0)))
        weight = jnp.pad(weight, ((0, pad), (0, pad)))     # zero cols kill pad rows
        bias = jnp.pad(bias, ((0, pad), (0, 0)))
    w_bf16 = weight.astype(jnp.bfloat16)                   # bf16 MXU operand

    cp_seq = pltpu.CompilerParams(dimension_semantics=("arbitrary",),
                                  vmem_limit_bytes=_VMEM_LIMIT)
    cp_par = pltpu.CompilerParams(dimension_semantics=("parallel",),
                                  vmem_limit_bytes=_VMEM_LIMIT)
    cp_gate = pltpu.CompilerParams(dimension_semantics=("parallel", "arbitrary"),
                                   vmem_limit_bytes=_VMEM_LIMIT)

    # -------------------------- kernel A: prep ----------------------------
    if tiny_attn:
        da = params["wq"].shape[1]
        # precompose V @ Wproj so the attention combine works in dh lanes
        wvp = jnp.dot(params["wv"], params["wproj"])       # [Dz, dh]
        bvp = jnp.dot(params["bv"], params["wproj"])       # [dh]
        wfused = jnp.concatenate([params["wq"], params["wk"], wvp], axis=1)
        bfused = jnp.concatenate(
            [params["bq"], params["bk"], bvp]).reshape(1, 2 * da + dh)
        bproj_rep = jnp.tile(params["bproj"].reshape(1, dh), (1, B))
        z_2d = z.reshape(S, B * Dz)                        # free contiguous view
        if pad:
            z_2d = jnp.pad(z_2d, ((0, pad), (0, 0)))

        prep = pl.pallas_call(
            functools.partial(_prep_attn_kernel, batch=B, d_z=Dz, d_half=dh,
                              d_attn=da, eps=eps, seq_len=S, tile=T),
            grid=(n_row,),
            in_specs=[
                pl.BlockSpec((T, B, dh), lambda i: (i, 0, 0)),       # z2
                pl.BlockSpec((1, 1, dh), lambda i: (0, 0, 0)),       # gamma
                pl.BlockSpec((1, 1, dh), lambda i: (0, 0, 0)),       # beta
                pl.BlockSpec((T, B * Dz), lambda i: (i, 0)),         # z (for QKV)
                pl.BlockSpec((Dz, 2 * da + dh), lambda i: (0, 0)),   # fused W
                pl.BlockSpec((1, 2 * da + dh), lambda i: (0, 0)),    # fused bias
            ],
            out_specs=[
                pl.BlockSpec((T, B, dh), lambda i: (i, 0, 0)),       # z2n (bf16)
                pl.BlockSpec((T, B * B), lambda i: (i, 0)),          # logits
                pl.BlockSpec((T, B * dh), lambda i: (i, 0)),         # V @ Wproj
                pl.BlockSpec((2, B * B), lambda i: (0, 0)),          # softmax stats
            ],
            out_shape=[
                jax.ShapeDtypeStruct((S_pad, B, dh), jnp.bfloat16),
                jax.ShapeDtypeStruct((S_pad, B * B), jnp.float32),
                jax.ShapeDtypeStruct((S_pad, B * dh), jnp.float32),
                jax.ShapeDtypeStruct((2, B * B), jnp.float32),
            ],
            scratch_shapes=[pltpu.VMEM((B, T, da), jnp.float32),
                            pltpu.VMEM((B, T, da), jnp.float32)],
            compiler_params=cp_seq,     # sequential: online softmax stats
        )
        z2n_3d, logits, vp_2d, stats = prep(z2_3d, gamma, beta, z_2d,
                                            wfused, bfused)
    else:
        prep = pl.pallas_call(
            functools.partial(_prep_kernel, eps=eps),
            grid=(n_row,),
            in_specs=[
                pl.BlockSpec((T, B, dh), lambda i: (i, 0, 0)),
                pl.BlockSpec((1, 1, dh), lambda i: (0, 0, 0)),
                pl.BlockSpec((1, 1, dh), lambda i: (0, 0, 0)),
            ],
            out_specs=pl.BlockSpec((T, B, dh), lambda i: (i, 0, 0)),
            out_shape=jax.ShapeDtypeStruct((S_pad, B, dh), jnp.bfloat16),
            compiler_params=cp_par,
        )
        z2n_3d = prep(z2_3d, gamma, beta)

    z2n_2d = z2n_3d.reshape(S_pad, B * dh)                 # free contiguous view

    # ----------------- kernel B: gating matmul + finalize ------------------
    if tiny_attn:
        out_2d = pl.pallas_call(
            functools.partial(_gate_attn_kernel, batch=B, d_half=dh),
            grid=(n_row, n_row),
            in_specs=[
                pl.BlockSpec((T, T), lambda i, j: (i, j)),           # W (bf16)
                pl.BlockSpec((T, B * dh), lambda i, j: (j, 0)),      # z2n (bf16)
                pl.BlockSpec((T, 1), lambda i, j: (i, 0)),           # bias
                pl.BlockSpec((T, B * dh), lambda i, j: (i, 0)),      # z1
                pl.BlockSpec((T, B * B), lambda i, j: (i, 0)),       # logits
                pl.BlockSpec((T, B * dh), lambda i, j: (i, 0)),      # V @ Wproj
                pl.BlockSpec((2, B * B), lambda i, j: (0, 0)),       # softmax stats
                pl.BlockSpec((1, B * dh), lambda i, j: (0, 0)),      # proj bias
            ],
            out_specs=pl.BlockSpec((T, B * dh), lambda i, j: (i, 0)),
            out_shape=jax.ShapeDtypeStruct((S_pad, B * dh), z.dtype),
            scratch_shapes=[pltpu.VMEM((T, B * dh), jnp.float32)],
            compiler_params=cp_gate,
        )(w_bf16, z2n_2d, bias, z1_2d, logits, vp_2d, stats, bproj_rep)
    else:
        out_2d = pl.pallas_call(
            _gate_kernel,
            grid=(n_row, n_row),
            in_specs=[
                pl.BlockSpec((T, T), lambda i, j: (i, j)),
                pl.BlockSpec((T, B * dh), lambda i, j: (j, 0)),
                pl.BlockSpec((T, 1), lambda i, j: (i, 0)),
                pl.BlockSpec((T, B * dh), lambda i, j: (i, 0)),
            ],
            out_specs=pl.BlockSpec((T, B * dh), lambda i, j: (i, 0)),
            out_shape=jax.ShapeDtypeStruct((S_pad, B * dh), z.dtype),
            scratch_shapes=[pltpu.VMEM((T, B * dh), jnp.float32)],
            compiler_params=cp_gate,
        )(w_bf16, z2n_2d, bias, z1_2d)

    return out_2d[:S].reshape(S, B, dh)                    # free contiguous view


# ---------------------------------------------------------------------------
# Pure-JAX mirror of the PyTorch forward (for verification)
# ---------------------------------------------------------------------------
def spatial_gating_unit_reference(z, params, *, tiny_attn=True, eps=1e-5):
    S, B, Dz = z.shape
    dh = Dz // 2
    da = params["wq"].shape[1]
    hp = jax.lax.Precision.HIGHEST
    z1, z2 = z[..., :dh], z[..., dh:]
    mu = z2.mean(-1, keepdims=True)
    var = ((z2 - mu) ** 2).mean(-1, keepdims=True)
    z2n = (z2 - mu) / jnp.sqrt(var + eps) * params["gamma"] + params["beta"]
    g = jnp.einsum('ij,jbd->ibd', params["weight"][:S, :S], z2n, precision=hp)
    g = g + params["bias"][:S, None, None]
    if tiny_attn:
        q = jnp.dot(z, params["wq"], precision=hp) + params["bq"]
        k = jnp.dot(z, params["wk"], precision=hp) + params["bk"]
        v = jnp.dot(z, params["wv"], precision=hp) + params["bv"]
        w = jnp.einsum('bnd,bmd->bnm', q, k, precision=hp) / jnp.sqrt(float(da))
        a = jax.nn.softmax(w, axis=0)        # torch nn.Softmax() implicit dim=0 on 3-D
        x = jnp.einsum('bnm,bmd->bnd', a, v, precision=hp)
        g = g + jnp.dot(x, params["wproj"], precision=hp) + params["bproj"]
    return z1 * g


def init_params(key, d_z, seq_len, d_attn=64):
    dh = d_z // 2
    ks = jax.random.split(key, 8)
    return {
        "weight": jax.random.uniform(ks[0], (seq_len, seq_len), jnp.float32, -0.01, 0.01),
        "bias": jnp.ones((seq_len,), jnp.float32),
        "gamma": jnp.ones((dh,), jnp.float32),
        "beta": jnp.zeros((dh,), jnp.float32),
        "wq": 0.1 * jax.random.normal(ks[1], (d_z, d_attn), jnp.float32),
        "wk": 0.1 * jax.random.normal(ks[2], (d_z, d_attn), jnp.float32),
        "wv": 0.1 * jax.random.normal(ks[3], (d_z, d_attn), jnp.float32),
        "bq": 0.01 * jax.random.normal(ks[4], (d_attn,), jnp.float32),
        "bk": 0.01 * jax.random.normal(ks[5], (d_attn,), jnp.float32),
        "bv": 0.01 * jax.random.normal(ks[6], (d_attn,), jnp.float32),
        "wproj": 0.1 * jax.random.normal(ks[7], (d_attn, dh), jnp.float32),
        "bproj": jnp.zeros((dh,), jnp.float32),
    }


if __name__ == "__main__":
    key = jax.random.PRNGKey(0)

    def check(S, B, Dz, tiny, atol, rtol):
        kz, kp = jax.random.split(jax.random.fold_in(key, 1000 * S + B))
        z = jax.random.normal(kz, (S, B, Dz), jnp.float32)
        params = init_params(kp, Dz, S)
        out = jax.block_until_ready(spatial_gating_unit(z, params, tiny_attn=tiny))
        ref = jax.block_until_ready(
            spatial_gating_unit_reference(z, params, tiny_attn=tiny))
        np.testing.assert_allclose(np.asarray(out), np.asarray(ref),
                                   atol=atol, rtol=rtol)

    # small shape (single-tile grid), both paths
    check(8, 2, 32, True, 5e-3, 5e-3)
    check(8, 2, 32, False, 5e-3, 5e-3)
    # larger, non-tile-multiple sequence: exercises the 2x2 gating grid, the
    # S-contraction accumulator, cross-tile online softmax stats and row masking
    # (bf16 spatial weight -> slightly looser tolerance).
    check(320, 2, 32, True, 1e-2, 1e-2)

    print("KERNEL_OK")
</pallas_src>

<mosaic_0001>
module attributes {stable_mosaic.version = 11 : i64} {
  func.func @_prep_attn_kernel(%arg0: i32, %arg1: memref<8x2x16xf32, #tpu.memory_space<vmem>>, %arg2: memref<1x1x16xf32, #tpu.memory_space<vmem>>, %arg3: memref<1x1x16xf32, #tpu.memory_space<vmem>>, %arg4: memref<8x64xf32, #tpu.memory_space<vmem>>, %arg5: memref<32x144xf32, #tpu.memory_space<vmem>>, %arg6: memref<1x144xf32, #tpu.memory_space<vmem>>, %arg7: memref<8x2x16xbf16, #tpu.memory_space<vmem>>, %arg8: memref<8x4xf32, #tpu.memory_space<vmem>>, %arg9: memref<8x32xf32, #tpu.memory_space<vmem>>, %arg10: memref<2x4xf32, #tpu.memory_space<vmem>>, %arg11: memref<2x8x64xf32, #tpu.memory_space<vmem>>, %arg12: memref<2x8x64xf32, #tpu.memory_space<vmem>>) attributes {dimension_semantics = [#tpu.dimension_semantics<arbitrary>], iteration_bounds = array<i64: 1>, scalar_prefetch = 0 : i64, scratch_operands = 2 : i64, tpu.core_type = #tpu.core_type<tc>, window_params = [{transform_indices = @transform_0, window_bounds = array<i64: 8, 2, 16>}, {pipeline_mode = #tpu.pipeline_mode<synchronous>, transform_indices = @transform_1, window_bounds = array<i64: 1, 1, 16>}, {pipeline_mode = #tpu.pipeline_mode<synchronous>, transform_indices = @transform_2, window_bounds = array<i64: 1, 1, 16>}, {transform_indices = @transform_3, window_bounds = array<i64: 8, 64>}, {pipeline_mode = #tpu.pipeline_mode<synchronous>, transform_indices = @transform_4, window_bounds = array<i64: 32, 144>}, {pipeline_mode = #tpu.pipeline_mode<synchronous>, transform_indices = @transform_5, window_bounds = array<i64: 1, 144>}, {transform_indices = @transform_6, window_bounds = array<i64: 8, 2, 16>}, {transform_indices = @transform_7, window_bounds = array<i64: 8, 4>}, {transform_indices = @transform_8, window_bounds = array<i64: 8, 32>}, {pipeline_mode = #tpu.pipeline_mode<synchronous>, transform_indices = @transform_9, window_bounds = array<i64: 2, 4>}]} {
    %c0 = arith.constant 0 : index
    %c0_0 = arith.constant 0 : index
    %c0_1 = arith.constant 0 : index
    %0 = vector.load %arg1[%c0, %c0_0, %c0_1] : memref<8x2x16xf32, #tpu.memory_space<vmem>>, vector<8x2x16xf32>
    %c0_2 = arith.constant 0 : index
    %c0_3 = arith.constant 0 : index
    %c0_4 = arith.constant 0 : index
    %1 = vector.load %arg2[%c0_2, %c0_3, %c0_4] : memref<1x1x16xf32, #tpu.memory_space<vmem>>, vector<1x1x16xf32>
    %c0_5 = arith.constant 0 : index
    %c0_6 = arith.constant 0 : index
    %c0_7 = arith.constant 0 : index
    %2 = vector.load %arg3[%c0_5, %c0_6, %c0_7] : memref<1x1x16xf32, #tpu.memory_space<vmem>>, vector<1x1x16xf32>
    %cst = arith.constant dense<0.000000e+00> : vector<8x2xf32>
    %3 = vector.multi_reduction <add>, %0, %cst [2] : vector<8x2x16xf32> to vector<8x2xf32>
    %4 = vector.shape_cast %3 : vector<8x2xf32> to vector<8x2x1xf32>
    %5 = arith.mulf %0, %0 : vector<8x2x16xf32>
    %cst_8 = arith.constant dense<0.000000e+00> : vector<8x2xf32>
    %6 = vector.multi_reduction <add>, %5, %cst_8 [2] : vector<8x2x16xf32> to vector<8x2xf32>
    %7 = vector.shape_cast %6 : vector<8x2xf32> to vector<8x2x1xf32>
    %cst_9 = arith.constant 6.250000e-02 : f32
    %8 = vector.broadcast %cst_9 : f32 to vector<8x2x1xf32>
    %9 = arith.mulf %4, %8 : vector<8x2x1xf32>
    %cst_10 = arith.constant 6.250000e-02 : f32
    %10 = vector.broadcast %cst_10 : f32 to vector<8x2x1xf32>
    %11 = arith.mulf %7, %10 : vector<8x2x1xf32>
    %12 = arith.mulf %9, %9 : vector<8x2x1xf32>
    %13 = arith.subf %11, %12 : vector<8x2x1xf32>
    %14 = vector.broadcast %9 : vector<8x2x1xf32> to vector<8x2x16xf32>
    %15 = arith.subf %0, %14 : vector<8x2x16xf32>
    %cst_11 = arith.constant 9.99999974E-6 : f32
    %16 = vector.broadcast %cst_11 : f32 to vector<8x2x1xf32>
    %17 = arith.addf %13, %16 : vector<8x2x1xf32>
    %18 = math.rsqrt %17 : vector<8x2x1xf32>
    %19 = vector.broadcast %18 : vector<8x2x1xf32> to vector<8x2x16xf32>
    %20 = arith.mulf %15, %19 : vector<8x2x16xf32>
    %21 = vector.broadcast %1 : vector<1x1x16xf32> to vector<8x2x16xf32>
    %22 = arith.mulf %20, %21 : vector<8x2x16xf32>
    %23 = vector.broadcast %2 : vector<1x1x16xf32> to vector<8x2x16xf32>
    %24 = arith.addf %22, %23 : vector<8x2x16xf32>
    %25 = arith.truncf %24 : vector<8x2x16xf32> to vector<8x2x16xbf16>
    %c0_12 = arith.constant 0 : index
    %c0_13 = arith.constant 0 : index
    %c0_14 = arith.constant 0 : index
    %26 = vector.load %arg7[%c0_12, %c0_13, %c0_14] : memref<8x2x16xbf16, #tpu.memory_space<vmem>>, vector<8x2x16xbf16>
    tpu.vector_store %arg7[%c0_12, %c0_13, %c0_14], %25 {strides = array<i32>} : memref<8x2x16xbf16, #tpu.memory_space<vmem>>, vector<8x2x16xbf16>,
    %c0_15 = arith.constant 0 : index
    %c0_16 = arith.constant 0 : index
    %27 = vector.load %arg5[%c0_15, %c0_16] : memref<32x144xf32, #tpu.memory_space<vmem>>, vector<32x144xf32>
    %c0_17 = arith.constant 0 : index
    %c0_18 = arith.constant 0 : index
    %28 = vector.load %arg6[%c0_17, %c0_18] : memref<1x144xf32, #tpu.memory_space<vmem>>, vector<1x144xf32>
    %c0_19 = arith.constant 0 : index
    %c0_20 = arith.constant 0 : index
    %29 = vector.load %arg4[%c0_19, %c0_20] : memref<8x64xf32, #tpu.memory_space<vmem>>, vector<8x32xf32>
    %cst_21 = arith.constant dense<0.000000e+00> : vector<8x144xf32>
    %30 = tpu.matmul %29, %27, %cst_21 {dimension_numbers = #tpu.dot_dimension_numbers<[1], [0], [0], [1], [0, 0, 1, 1], [], []>} : vector<8x32xf32>, vector<32x144xf32>, vector<8x144xf32> -> vector<8x144xf32>
    %31 = vector.broadcast %28 : vector<1x144xf32> to vector<8x144xf32>
    %32 = arith.addf %30, %31 : vector<8x144xf32>
    %33 = vector.extract_strided_slice %32 {offsets = [0, 0], sizes = [8, 64], strides = [1, 1]} : vector<8x144xf32> to vector<8x64xf32>
    %c0_22 = arith.constant 0 : index
    %c0_23 = arith.constant 0 : index
    %c0_24 = arith.constant 0 : index
    %34 = vector.load %arg11[%c0_22, %c0_23, %c0_24] : memref<2x8x64xf32, #tpu.memory_space<vmem>>, vector<1x8x64xf32>
    %35 = vector.shape_cast %34 : vector<1x8x64xf32> to vector<8x64xf32>
    %36 = vector.shape_cast %33 : vector<8x64xf32> to vector<1x8x64xf32>
    tpu.vector_store %arg11[%c0_22, %c0_23, %c0_24], %36 {strides = array<i32>} : memref<2x8x64xf32, #tpu.memory_space<vmem>>, vector<1x8x64xf32>,
    %37 = vector.extract_strided_slice %32 {offsets = [0, 64], sizes = [8, 64], strides = [1, 1]} : vector<8x144xf32> to vector<8x64xf32>
    %c0_25 = arith.constant 0 : index
    %c0_26 = arith.constant 0 : index
    %c0_27 = arith.constant 0 : index
    %38 = vector.load %arg12[%c0_25, %c0_26, %c0_27] : memref<2x8x64xf32, #tpu.memory_space<vmem>>, vector<1x8x64xf32>
    %39 = vector.shape_cast %38 : vector<1x8x64xf32> to vector<8x64xf32>
    %40 = vector.shape_cast %37 : vector<8x64xf32> to vector<1x8x64xf32>
    tpu.vector_store %arg12[%c0_25, %c0_26, %c0_27], %40 {strides = array<i32>} : memref<2x8x64xf32, #tpu.memory_space<vmem>>, vector<1x8x64xf32>,
    %41 = vector.extract_strided_slice %32 {offsets = [0, 128], sizes = [8, 16], strides = [1, 1]} : vector<8x144xf32> to vector<8x16xf32>
    %c0_28 = arith.constant 0 : index
    %c0_29 = arith.constant 0 : index
    %42 = vector.load %arg9[%c0_28, %c0_29] : memref<8x32xf32, #tpu.memory_space<vmem>>, vector<8x16xf32>
    tpu.vector_store %arg9[%c0_28, %c0_29], %41 {strides = array<i32>} : memref<8x32xf32, #tpu.memory_space<vmem>>, vector<8x16xf32>,
    %c0_30 = arith.constant 0 : index
    %c32 = arith.constant 32 : index
    %43 = vector.load %arg4[%c0_30, %c32] : memref<8x64xf32, #tpu.memory_space<vmem>>, vector<8x32xf32>
    %cst_31 = arith.constant dense<0.000000e+00> : vector<8x144xf32>
    %44 = tpu.matmul %43, %27, %cst_31 {dimension_numbers = #tpu.dot_dimension_numbers<[1], [0], [0], [1], [0, 0, 1, 1], [], []>} : vector<8x32xf32>, vector<32x144xf32>, vector<8x144xf32> -> vector<8x144xf32>
    %45 = vector.broadcast %28 : vector<1x144xf32> to vector<8x144xf32>
    %46 = arith.addf %44, %45 : vector<8x144xf32>
    %47 = vector.extract_strided_slice %46 {offsets = [0, 0], sizes = [8, 64], strides = [1, 1]} : vector<8x144xf32> to vector<8x64xf32>
    %c1 = arith.constant 1 : index
    %c0_32 = arith.constant 0 : index
    %c0_33 = arith.constant 0 : index
    %48 = vector.load %arg11[%c1, %c0_32, %c0_33] : memref<2x8x64xf32, #tpu.memory_space<vmem>>, vector<1x8x64xf32>
    %49 = vector.shape_cast %48 : vector<1x8x64xf32> to vector<8x64xf32>
    %50 = vector.shape_cast %47 : vector<8x64xf32> to vector<1x8x64xf32>
    tpu.vector_store %arg11[%c1, %c0_32, %c0_33], %50 {strides = array<i32>} : memref<2x8x64xf32, #tpu.memory_space<vmem>>, vector<1x8x64xf32>,
    %51 = vector.extract_strided_slice %46 {offsets = [0, 64], sizes = [8, 64], strides = [1, 1]} : vector<8x144xf32> to vector<8x64xf32>
    %c1_34 = arith.constant 1 : index
    %c0_35 = arith.constant 0 : index
    %c0_36 = arith.constant 0 : index
    %52 = vector.load %arg12[%c1_34, %c0_35, %c0_36] : memref<2x8x64xf32, #tpu.memory_space<vmem>>, vector<1x8x64xf32>
    %53 = vector.shape_cast %52 : vector<1x8x64xf32> to vector<8x64xf32>
    %54 = vector.shape_cast %51 : vector<8x64xf32> to vector<1x8x64xf32>
    tpu.vector_store %arg12[%c1_34, %c0_35, %c0_36], %54 {strides = array<i32>} : memref<2x8x64xf32, #tpu.memory_space<vmem>>, vector<1x8x64xf32>,
    %55 = vector.extract_strided_slice %46 {offsets = [0, 128], sizes = [8, 16], strides = [1, 1]} : vector<8x144xf32> to vector<8x16xf32>
    %c0_37 = arith.constant 0 : index
    %c16 = arith.constant 16 : index
    %56 = vector.load %arg9[%c0_37, %c16] : memref<8x32xf32, #tpu.memory_space<vmem>>, vector<8x16xf32>
    tpu.vector_store %arg9[%c0_37, %c16], %55 {strides = array<i32>} : memref<8x32xf32, #tpu.memory_space<vmem>>, vector<8x16xf32>,
    %c0_38 = arith.constant 0 : index
    %c0_39 = arith.constant 0 : index
    %c0_40 = arith.constant 0 : index
    %57 = vector.load %arg11[%c0_38, %c0_39, %c0_40] : memref<2x8x64xf32, #tpu.memory_space<vmem>>, vector<1x8x64xf32>
    %58 = vector.shape_cast %57 : vector<1x8x64xf32> to vector<8x64xf32>
    %c0_41 = arith.constant 0 : index
    %c0_42 = arith.constant 0 : index
    %c0_43 = arith.constant 0 : index
    %59 = vector.load %arg12[%c0_41, %c0_42, %c0_43] : memref<2x8x64xf32, #tpu.memory_space<vmem>>, vector<1x8x64xf32>
    %60 = vector.shape_cast %59 : vector<1x8x64xf32> to vector<8x64xf32>
    %61 = arith.mulf %58, %60 : vector<8x64xf32>
    %cst_44 = arith.constant dense<0.000000e+00> : vector<8xf32>
    %62 = vector.multi_reduction <add>, %61, %cst_44 [1] : vector<8x64xf32> to vector<8xf32>
    %63 = vector.shape_cast %62 : vector<8xf32> to vector<8x1xf32>
    %cst_45 = arith.constant 1.250000e-01 : f32
    %64 = vector.broadcast %cst_45 : f32 to vector<8x1xf32>
    %65 = arith.mulf %63, %64 : vector<8x1xf32>
    %c0_46 = arith.constant 0 : index
    %c0_47 = arith.constant 0 : index
    %66 = vector.load %arg8[%c0_46, %c0_47] : memref<8x4xf32, #tpu.memory_space<vmem>>, vector<8x1xf32>
    tpu.vector_store %arg8[%c0_46, %c0_47], %65 {strides = array<i32>} : memref<8x4xf32, #tpu.memory_space<vmem>>, vector<8x1xf32>,
    %c0_48 = arith.constant 0 : index
    %c0_49 = arith.constant 0 : index
    %c0_50 = arith.constant 0 : index
    %67 = vector.load %arg11[%c0_48, %c0_49, %c0_50] : memref<2x8x64xf32, #tpu.memory_space<vmem>>, vector<1x8x64xf32>
    %68 = vector.shape_cast %67 : vector<1x8x64xf32> to vector<8x64xf32>
    %c1_51 = arith.constant 1 : index
    %c0_52 = arith.constant 0 : index
    %c0_53 = arith.constant 0 : index
    %69 = vector.load %arg12[%c1_51, %c0_52, %c0_53] : memref<2x8x64xf32, #tpu.memory_space<vmem>>, vector<1x8x64xf32>
    %70 = vector.shape_cast %69 : vector<1x8x64xf32> to vector<8x64xf32>
    %71 = arith.mulf %68, %70 : vector<8x64xf32>
    %cst_54 = arith.constant dense<0.000000e+00> : vector<8xf32>
    %72 = vector.multi_reduction <add>, %71, %cst_54 [1] : vector<8x64xf32> to vector<8xf32>
    %73 = vector.shape_cast %72 : vector<8xf32> to vector<8x1xf32>
    %cst_55 = arith.constant 1.250000e-01 : f32
    %74 = vector.broadcast %cst_55 : f32 to vector<8x1xf32>
    %75 = arith.mulf %73, %74 : vector<8x1xf32>
    %c0_56 = arith.constant 0 : index
    %c1_57 = arith.constant 1 : index
    %76 = vector.load %arg8[%c0_56, %c1_57] : memref<8x4xf32, #tpu.memory_space<vmem>>, vector<8x1xf32>
    tpu.vector_store %arg8[%c0_56, %c1_57], %75 {strides = array<i32>} : memref<8x4xf32, #tpu.memory_space<vmem>>, vector<8x1xf32>,
    %c1_58 = arith.constant 1 : index
    %c0_59 = arith.constant 0 : index
    %c0_60 = arith.constant 0 : index
    %77 = vector.load %arg11[%c1_58, %c0_59, %c0_60] : memref<2x8x64xf32, #tpu.memory_space<vmem>>, vector<1x8x64xf32>
    %78 = vector.shape_cast %77 : vector<1x8x64xf32> to vector<8x64xf32>
    %c0_61 = arith.constant 0 : index
    %c0_62 = arith.constant 0 : index
    %c0_63 = arith.constant 0 : index
    %79 = vector.load %arg12[%c0_61, %c0_62, %c0_63] : memref<2x8x64xf32, #tpu.memory_space<vmem>>, vector<1x8x64xf32>
    %80 = vector.shape_cast %79 : vector<1x8x64xf32> to vector<8x64xf32>
    %81 = arith.mulf %78, %80 : vector<8x64xf32>
    %cst_64 = arith.constant dense<0.000000e+00> : vector<8xf32>
    %82 = vector.multi_reduction <add>, %81, %cst_64 [1] : vector<8x64xf32> to vector<8xf32>
    %83 = vector.shape_cast %82 : vector<8xf32> to vector<8x1xf32>
    %cst_65 = arith.constant 1.250000e-01 : f32
    %84 = vector.broadcast %cst_65 : f32 to vector<8x1xf32>
    %85 = arith.mulf %83, %84 : vector<8x1xf32>
    %c0_66 = arith.constant 0 : index
    %c2 = arith.constant 2 : index
    %86 = vector.load %arg8[%c0_66, %c2] : memref<8x4xf32, #tpu.memory_space<vmem>>, vector<8x1xf32>
    tpu.vector_store %arg8[%c0_66, %c2], %85 {strides = array<i32>} : memref<8x4xf32, #tpu.memory_space<vmem>>, vector<8x1xf32>,
    %c1_67 = arith.constant 1 : index
    %c0_68 = arith.constant 0 : index
    %c0_69 = arith.constant 0 : index
    %87 = vector.load %arg11[%c1_67, %c0_68, %c0_69] : memref<2x8x64xf32, #tpu.memory_space<vmem>>, vector<1x8x64xf32>
    %88 = vector.shape_cast %87 : vector<1x8x64xf32> to vector<8x64xf32>
    %c1_70 = arith.constant 1 : index
    %c0_71 = arith.constant 0 : index
    %c0_72 = arith.constant 0 : index
    %89 = vector.load %arg12[%c1_70, %c0_71, %c0_72] : memref<2x8x64xf32, #tpu.memory_space<vmem>>, vector<1x8x64xf32>
    %90 = vector.shape_cast %89 : vector<1x8x64xf32> to vector<8x64xf32>
    %91 = arith.mulf %88, %90 : vector<8x64xf32>
    %cst_73 = arith.constant dense<0.000000e+00> : vector<8xf32>
    %92 = vector.multi_reduction <add>, %91, %cst_73 [1] : vector<8x64xf32> to vector<8xf32>
    %93 = vector.shape_cast %92 : vector<8xf32> to vector<8x1xf32>
    %cst_74 = arith.constant 1.250000e-01 : f32
    %94 = vector.broadcast %cst_74 : f32 to vector<8x1xf32>
    %95 = arith.mulf %93, %94 : vector<8x1xf32>
    %c0_75 = arith.constant 0 : index
    %c3 = arith.constant 3 : index
    %96 = vector.load %arg8[%c0_75, %c3] : memref<8x4xf32, #tpu.memory_space<vmem>>, vector<8x1xf32>
    tpu.vector_store %arg8[%c0_75, %c3], %95 {strides = array<i32>} : memref<8x4xf32, #tpu.memory_space<vmem>>, vector<8x1xf32>,
    %c0_76 = arith.constant 0 : index
    %c0_77 = arith.constant 0 : index
    %97 = vector.load %arg8[%c0_76, %c0_77] : memref<8x4xf32, #tpu.memory_space<vmem>>, vector<8x4xf32>
    %cst_78 = arith.constant dense<0xFF800000> : vector<4xf32>
    %98 = vector.multi_reduction <maximumf>, %97, %cst_78 [0] : vector<8x4xf32> to vector<4xf32>
    %99 = vector.shape_cast %98 : vector<4xf32> to vector<1x4xf32>
    %c0_i32 = arith.constant 0 : i32
    %100 = arith.cmpi eq, %arg0, %c0_i32 : i32
    %101 = arith.extui %100 : i1 to i32
    %c0_i32_79 = arith.constant 0 : i32
    %102 = arith.cmpi ne, %101, %c0_i32_79 : i32
    scf.if %102 {
      %cst_89 = arith.constant 0xFF800000 : f32
      %117 = vector.broadcast %cst_89 : f32 to vector<1x4xf32>
      %c0_90 = arith.constant 0 : index
      %c0_91 = arith.constant 0 : index
      %118 = vector.load %arg10[%c0_90, %c0_91] : memref<2x4xf32, #tpu.memory_space<vmem>>, vector<1x4xf32>
      tpu.vector_store %arg10[%c0_90, %c0_91], %117 {strides = array<i32>} : memref<2x4xf32, #tpu.memory_space<vmem>>, vector<1x4xf32>,
      %cst_92 = arith.constant 0.000000e+00 : f32
      %119 = vector.broadcast %cst_92 : f32 to vector<1x4xf32>
      %c1_93 = arith.constant 1 : index
      %c0_94 = arith.constant 0 : index
      %120 = vector.load %arg10[%c1_93, %c0_94] : memref<2x4xf32, #tpu.memory_space<vmem>>, vector<1x4xf32>
      tpu.vector_store %arg10[%c1_93, %c0_94], %119 {strides = array<i32>} : memref<2x4xf32, #tpu.memory_space<vmem>>, vector<1x4xf32>,
    } else {
    }
    %c0_80 = arith.constant 0 : index
    %c0_81 = arith.constant 0 : index
    %103 = vector.load %arg10[%c0_80, %c0_81] : memref<2x4xf32, #tpu.memory_space<vmem>>, vector<1x4xf32>
    %104 = arith.maximumf %103, %99 : vector<1x4xf32>
    %c1_82 = arith.constant 1 : index
    %c0_83 = arith.constant 0 : index
    %105 = vector.load %arg10[%c1_82, %c0_83] : memref<2x4xf32, #tpu.memory_space<vmem>>, vector<1x4xf32>
    %106 = arith.subf %103, %104 : vector<1x4xf32>
    %107 = math.exp %106 : vector<1x4xf32>
    %108 = arith.mulf %105, %107 : vector<1x4xf32>
    %109 = vector.broadcast %104 : vector<1x4xf32> to vector<8x4xf32>
    %110 = arith.subf %97, %109 : vector<8x4xf32>
    %111 = math.exp %110 : vector<8x4xf32>
    %cst_84 = arith.constant dense<0.000000e+00> : vector<4xf32>
    %112 = vector.multi_reduction <add>, %111, %cst_84 [0] : vector<8x4xf32> to vector<4xf32>
    %113 = vector.shape_cast %112 : vector<4xf32> to vector<1x4xf32>
    %114 = arith.addf %108, %113 : vector<1x4xf32>
    %c1_85 = arith.constant 1 : index
    %c0_86 = arith.constant 0 : index
    %115 = vector.load %arg10[%c1_85, %c0_86] : memref<2x4xf32, #tpu.memory_space<vmem>>, vector<1x4xf32>
    tpu.vector_store %arg10[%c1_85, %c0_86], %114 {strides = array<i32>} : memref<2x4xf32, #tpu.memory_space<vmem>>, vector<1x4xf32>,
    %c0_87 = arith.constant 0 : index
    %c0_88 = arith.constant 0 : index
    %116 = vector.load %arg10[%c0_87, %c0_88] : memref<2x4xf32, #tpu.memory_space<vmem>>, vector<1x4xf32>
    tpu.vector_store %arg10[%c0_87, %c0_88], %104 {strides = array<i32>} : memref<2x4xf32, #tpu.memory_space<vmem>>, vector<1x4xf32>,
    return
  }
  func.func @transform_0(%arg0: i32) -> (i32, i32, i32) {
    %c0_i32 = arith.constant 0 : i32
    %c0_i32_0 = arith.constant 0 : i32
    %c0_i32_1 = arith.constant 0 : i32
    return %arg0, %c0_i32, %c0_i32_0 : i32, i32, i32
  }
  func.func @transform_1(%arg0: i32) -> (i32, i32, i32) {
    %c0_i32 = arith.constant 0 : i32
    %c0_i32_0 = arith.constant 0 : i32
    %c0_i32_1 = arith.constant 0 : i32
    %c0_i32_2 = arith.constant 0 : i32
    return %c0_i32, %c0_i32_0, %c0_i32_1 : i32, i32, i32
  }
  func.func @transform_2(%arg0: i32) -> (i32, i32, i32) {
    %c0_i32 = arith.constant 0 : i32
    %c0_i32_0 = arith.constant 0 : i32
    %c0_i32_1 = arith.constant 0 : i32
    %c0_i32_2 = arith.constant 0 : i32
    return %c0_i32, %c0_i32_0, %c0_i32_1 : i32, i32, i32
  }
  func.func @transform_3(%arg0: i32) -> (i32, i32) {
    %c0_i32 = arith.constant 0 : i32
    %c0_i32_0 = arith.constant 0 : i32
    return %arg0, %c0_i32 : i32, i32
  }
  func.func @transform_4(%arg0: i32) -> (i32, i32) {
    %c0_i32 = arith.constant 0 : i32
    %c0_i32_0 = arith.constant 0 : i32
    %c0_i32_1 = arith.constant 0 : i32
    return %c0_i32, %c0_i32_0 : i32, i32
  }
  func.func @transform_5(%arg0: i32) -> (i32, i32) {
    %c0_i32 = arith.constant 0 : i32
    %c0_i32_0 = arith.constant 0 : i32
    %c0_i32_1 = arith.constant 0 : i32
    return %c0_i32, %c0_i32_0 : i32, i32
  }
  func.func @transform_6(%arg0: i32) -> (i32, i32, i32) {
    %c0_i32 = arith.constant 0 : i32
    %c0_i32_0 = arith.constant 0 : i32
    %c0_i32_1 = arith.constant 0 : i32
    return %arg0, %c0_i32, %c0_i32_0 : i32, i32, i32
  }
  func.func @transform_7(%arg0: i32) -> (i32, i32) {
    %c0_i32 = arith.constant 0 : i32
    %c0_i32_0 = arith.constant 0 : i32
    return %arg0, %c0_i32 : i32, i32
  }
  func.func @transform_8(%arg0: i32) -> (i32, i32) {
    %c0_i32 = arith.constant 0 : i32
    %c0_i32_0 = arith.constant 0 : i32
    return %arg0, %c0_i32 : i32, i32
  }
  func.func @transform_9(%arg0: i32) -> (i32, i32) {
    %c0_i32 = arith.constant 0 : i32
    %c0_i32_0 = arith.constant 0 : i32
    %c0_i32_1 = arith.constant 0 : i32
    return %c0_i32, %c0_i32_0 : i32, i32
  }
}

</mosaic_0001>

<bundles_post_ra>
// kernel: tpu_custom_call.1
= control target key start
LH: loop header
LB: loop body
LE: loop exit
PB: predicated region body
PF: predicated region fallthrough
CT: control target
= control target key end

     0   :  { %15 = vsyncpa [#allocation5], 0  ;;  %s1047_s0 = inlined_call_operand.hbm [shape: f32[8,2,16], index: 0, kind: input, shape index: {}]   ;;  %s1048_s1 = inlined_call_operand.vmem [shape: f32[1,1,16], index: 1, kind: input, shape index: {}]   ;;  %s1049_s2 = inlined_call_operand.hbm [shape: f32[1,1,16], index: 2, kind: input, shape index: {}]   ;;  %s1050_s3 = inlined_call_operand.hbm [shape: f32[8,64], index: 3, kind: input, shape index: {}]   ;;  %s1051_s4 = inlined_call_operand.hbm [shape: f32[32,144], index: 4, kind: input, shape index: {}]   ;;  %s1052_s5 = inlined_call_operand.vmem [shape: f32[1,144], index: 5, kind: input, shape index: {}]   ;;  %s1053_s6 = inlined_call_operand.hbm [shape: bf16[8,2,16], index: 6, kind: output, shape index: {0}]   ;;  %s1054_s7 = inlined_call_operand.vmem [shape: f32[8,4], index: 7, kind: output, shape index: {1}]   ;;  %s1055_s8 = inlined_call_operand.hbm [shape: f32[8,32], index: 8, kind: output, shape index: {2}]   ;;  %s1056_s9 = inlined_call_operand.hbm [shape: f32[2,4], index: 9, kind: output, shape index: {3}]  }
   0x1   :  { %16 = vsyncpa [#allocation8], 0 }
   0x2   :  { %17 = vsyncpa [#allocation11], 0 }
   0x3   :  { %18 = vsyncpa [#allocation6], 0 }
   0x4   :  { %19 = vsyncpa [#allocation14], 0  ;;  %s769_s30 = smov [#allocation7]   ;;  %s770_s11 = smov [#allocation4]  }
   0x5   :  { %s40_s10 = sshll.u32 %s769_s30, 4  ;;  %s25_s12 = sshll.u32 %s770_s11, 4  ;;  %s41_s10 = int_to_ptr.vmem [resolvable:$true] %s40_s10  ;;  %s26_s12 = int_to_ptr.vmem [resolvable:$true] %s25_s12 }
   0x6   :  { %s627_s13 = scalar_lea.vmem %s41_s10, 16  ;;  %s631_s14 = scalar_lea.vmem %s41_s10, 32 }
   0x7   :  { %p628_p0 = scmp.ne.s32.totalorder %s41_s10, %s627_s13  ;;  %p632_p1 = scmp.lt.s32.totalorder %s41_s10, %s41_s10 }
   0x8   :  { %p633_p2 = scmp.lt.s32.totalorder %s631_s14, %s627_s13 }
   0xa   :  { %p634_p3 = por %p633_p2, %p632_p1 }
   0xc   :  { %p635_p4 = pnand %p634_p3, %p628_p0 }
   0xe   :  { %638 = shalt.err (!%p635_p4)
}
   0xf   :  { %43 = dma.hbm_to_vmem [thread:$0]  %s1049_s2, 16, %s41_s10, [#allocation8]  }
  0x10   :  { %s647_s17 = scalar_lea.vmem %s26_s12, 256  ;;  %p652_p6 = scmp.lt.s32.totalorder %s26_s12, %s26_s12 }
  0x11   :  { %p648_p5 = scmp.ne.s32.totalorder %s26_s12, %s647_s17  ;;  %p653_p7 = scmp.lt.s32.totalorder %s647_s17, %s647_s17 }
  0x13   :  { %p654_p8 = por %p653_p7, %p652_p6 }
  0x15   :  { %p655_p9 = pnand %p654_p8, %p648_p5 }
  0x17   :  { %658 = shalt.err (!%p655_p9)
}
  0x18   :  { %s771_s18 = smov 32   ;;  %s772_s19 = smov 2  }
  0x19   :  { %31 = dma.hbm_to_vmem [thread:$0]  %s1047_s0, 256, %s26_s12, [#allocation5], %s771_s18, %s771_s18, %s772_s19  }
  0x1a   :  { %s773_s22 = smov [#allocation9]   ;;  %s774_s24 = smov [#allocation10]  }
  0x1b   :  { %s50_s23 = sshll.u32 %s773_s22, 4  ;;  %s59_s25 = sshll.u32 %s774_s24, 4  ;;  %s51_s23 = int_to_ptr.vmem [resolvable:$true] %s50_s23  ;;  %s60_s25 = int_to_ptr.vmem [resolvable:$true] %s59_s25 }
  0x1c   :  { %s667_s2 = scalar_lea.vmem %s51_s23, 128  ;;  %p672_p11 = scmp.lt.s32.totalorder %s51_s23, %s51_s23 }
  0x1d   :  { %p668_p10 = scmp.ne.s32.totalorder %s51_s23, %s667_s2  ;;  %p673_p12 = scmp.lt.s32.totalorder %s667_s2, %s667_s2 }
  0x1f   :  { %p674_p13 = por %p673_p12, %p672_p11 }
  0x21   :  { %p675_p0 = pnand %p674_p13, %p668_p10 }
  0x23   :  { %678 = shalt.err (!%p675_p0)
}
  0x24   :  { %53 = dma.hbm_to_vmem [thread:$0]  %s1050_s3, 128, %s51_s23, [#allocation8]  }
  0x25   :  { %s687_s28 = scalar_lea.vmem %s60_s25, 1024  ;;  %p692_p2 = scmp.lt.s32.totalorder %s60_s25, %s60_s25 }
  0x26   :  { %p688_p1 = scmp.ne.s32.totalorder %s60_s25, %s687_s28  ;;  %p693_p3 = scmp.lt.s32.totalorder %s687_s28, %s687_s28 }
  0x28   :  { %p694_p4 = por %p693_p3, %p692_p2 }
  0x2a   :  { %p695_p5 = pnand %p694_p4, %p688_p1 }
  0x2c   :  { %698 = shalt.err (!%p695_p5)
}
  0x2d   :  { %s775_s0 = smov 256   ;;  %s776_s29 = smov 16  }
  0x2e   :  { %65 = dma.hbm_to_vmem [thread:$0]  %s1051_s4, 1024, %s60_s25, [#allocation11], %s775_s0, %s775_s0, %s776_s29  }
  0x2f   :  { %759 = dma.done.wait [#allocation5], 256  }
  0x30   :  { %760 = vsyncadd [#allocation5], 4294967040 }
  0x31   :  { %761 = dma.done.wait [#allocation8], 144  }
  0x32   :  { %762 = vsyncadd [#allocation8], 4294967152 }
  0x33   :  { %763 = dma.done.wait [#allocation11], 1024  }
  0x34   :  { %764 = vsyncadd [#allocation11], 4294966272  ;;  %vm501_vm0 = vcmask 24576   ;;  %v777_v0 = vmov 0.0   ;;  %v361_v1 = vld [vmem:[#allocation9] sm:$0xff]  ;;  %v262_v3 = vld [vmem:[#allocation10 + $0x30] sm:$0xff]  ;;  %v267_v11 = vlaneseq }
  0x35   :  { %345 = vmatprep.mubr.f32.mxu0 %v777_v0  ;;  %503 = vst.msk [vmem:[#allocation15 + $0x1] sm:$0x1] %vm501_vm0, %v777_v0  ;;  %431 = vmatprep.mubr.f32.mxu1 %v777_v0  ;;  %v263_v2 = vld [vmem:[#allocation10 + $0x38] sm:$0xff]  ;;  %s778_s3 = smov 96   ;;  %v261_v4 = vld [vmem:[#allocation10 + $0x28] sm:$0xff]  ;;  %v260_v5 = vld [vmem:[#allocation10 + $0x20] sm:$0xff] }
  0x36   :  { %363 = vrot.lane.b32.xlu0 %v361_v1, %s778_s3  ;;  %305 = vmatprep.subr.mxu0 %v263_v2  ;;  %v259_v6 = vld [vmem:[#allocation10 + $0x18] sm:$0xff]  ;;  %v258_v7 = vld [vmem:[#allocation10 + $0x10] sm:$0xff]  ;;  %v257_v8 = vld [vmem:[#allocation10 + $0x8] sm:$0xff]  ;;  %vm277_vm1 = vcmask 261120   ;;  %v849_v12 = vshrl.u32 %v267_v11, 7  ;;  %vm352_vm2 = vcmask 523264  }
  0x37   :  { %306 = vmatpush1.msra.mxu0 %v262_v3  ;;  %391 = vmatprep.subr.mxu1 %v263_v2  ;;  %v256_v9 = vld [vmem:[#allocation10] sm:$0xff]  ;;  %vm359_vm3 = vcmask 130048   ;;  %s779_s12 = smov 64   ;;  %v866_v34 = vld [vmem:[#allocation4 + $0x2] sm:$0x3]  ;;  %vm90_vm4 = vcmask 123904  }
  0x38   :  { %307 = vmatprep.subr.mxu0 %v261_v4  ;;  %392 = vmatpush1.msra.mxu1 %v262_v3  ;;  %v269_v13 = vsub.s32 0, %v849_v12  ;;  %v264_v14 = vld [vmem:[%s1052_s5] sm:$0x3]  ;;  %v273_v15 = vsub.s32 1, %v849_v12  ;;  %v94_v38 = vsel %vm90_vm4, %v866_v34, 0.0  ;;  %v116_v52 = vmul.f32 %v866_v34, %v866_v34 }
  0x39   :  { %308 = vmatpush1.msra.mxu0 %v260_v5  ;;  %393 = vmatprep.subr.mxu1 %v261_v4  ;;  %v872_v39 = vld [vmem:[#allocation4 + $0x6] sm:$0x3]  ;;  %v874_v40 = vld [vmem:[#allocation4] sm:$0x3]  ;;  %v881_v44 = vld [vmem:[#allocation4 + $0xa] sm:$0x3] }
  0x3a   :  { %309 = vmatprep.subr.mxu0 %v259_v6  ;;  %394 = vmatpush1.msra.mxu1 %v260_v5  ;;  %v270_v16 = vrot.slane %v264_v14, %v269_v13  ;;  %v858_v17 = vrot.slane %v264_v14, %v273_v15  ;;  %v100_v42 = vsel %vm90_vm4, %v872_v39, 0.0  ;;  %v91_v43 = vsel %vm90_vm4, %v874_v40, 0.0  ;;  %v883_v45 = vld [vmem:[#allocation4 + $0x4] sm:$0x3]  ;;  %v889_v48 = vld [vmem:[#allocation4 + $0xe] sm:$0x3] }
  0x3b   :  { %310 = vmatpush1.msra.mxu0 %v258_v7  ;;  %395 = vmatprep.subr.mxu1 %v259_v6  ;;  %v106_v46 = vsel %vm90_vm4, %v881_v44, 0.0  ;;  %v97_v47 = vsel %vm90_vm4, %v883_v45, 0.0  ;;  %v891_v49 = vld [vmem:[#allocation4 + $0x8] sm:$0x3]  ;;  %v112_v50 = vsel %vm90_vm4, %v889_v48, 0.0  ;;  %v126_v54 = vsel %vm90_vm4, %v116_v52, 0.0 }
  0x3c   :  { %311 = vmatprep.subr.mxu0 %v257_v8  ;;  %396 = vmatpush1.msra.mxu1 %v258_v7  ;;  %v103_v51 = vsel %vm90_vm4, %v891_v49, 0.0  ;;  %v899_v53 = vld [vmem:[#allocation4 + $0xc] sm:$0x3]  ;;  %v118_v56 = vmul.f32 %v872_v39, %v872_v39  ;;  %v115_v57 = vmul.f32 %v874_v40, %v874_v40  ;;  %v120_v60 = vmul.f32 %v881_v44, %v881_v44 }
  0x3d   :  { %312 = vmatpush1.msra.mxu0 %v256_v9  ;;  %397 = vmatprep.subr.mxu1 %v257_v8  ;;  %v109_v55 = vsel %vm90_vm4, %v899_v53, 0.0  ;;  %v117_v61 = vmul.f32 %v883_v45, %v883_v45  ;;  %v122_v0 = vmul.f32 %v889_v48, %v889_v48  ;;  %v121_v4 = vmul.f32 %v899_v53, %v899_v53 }
  0x3e   :  { %581 = vmatmul.mubr.msk.f32.vlgmr.msra.gmra.mxu0 %vm277_vm1, %v361_v1  ;;  %398 = vmatpush1.msra.mxu1 %v256_v9  ;;  %v132_v58 = vsel %vm90_vm4, %v118_v56, 0.0  ;;  %v123_v59 = vsel %vm90_vm4, %v115_v57, 0.0  ;;  %v138_v62 = vsel %vm90_vm4, %v120_v60, 0.0  ;;  %v119_v1 = vmul.f32 %v891_v49, %v891_v49 }
  0x3f   :  { %v129_v63 = vsel %vm90_vm4, %v117_v61, 0.0  ;;  %v144_v2 = vsel %vm90_vm4, %v122_v0, 0.0  ;;  %v780_v5 = vmov -inf   ;;  %v141_v6 = vsel %vm90_vm4, %v121_v4, 0.0 }
  0x40   :  { %v135_v3 = vsel %vm90_vm4, %v119_v1, 0.0  ;;  %502 = vst.msk [vmem:[#allocation15] sm:$0x1] %vm501_vm0, %v780_v5  ;;  %vm459_vm5 = vcmask 7168   ;;  %vm468_vm6 = vcmask 15368   ;;  %vm477_vm7 = vcmask 23568  }
  0x41   :  { %vm486_vm8 = vcmask 31768   ;;  %vm489_vm9 = vcmask 31744   ;;  %vm450_vm10 = vcmask 261248  }
  0x47   :  { %v965_v61 = vld [vmem:[#allocation15] sm:$0x1] }
  0xa8   :  { %v364_v10 = vpop.permute.xlu0 %363 }
  0xa9   :  { %582 = vmatmul.mubr.msk.f32.vlgmr.msra.gmra.mxu1 %vm277_vm1, %v364_v10 }
  0xfe   :  { %v347_v18 = vpop.f32.mrf.mxu0 }
  0xff   :  { %v348_v19 = vadd.f32 %v347_v18, %v270_v16 }
 0x100   :  { %v349_v20 = vpop.f32.mrf.mxu0 }
 0x101   :  { %353 = vst.msk [vmem:[#allocation2] sm:$0xff] %vm352_vm2, %v348_v19  ;;  %355 = vrot.lane.b32.xlu0 %v348_v19, %s779_s12  ;;  %v350_v21 = vadd.f32 %v349_v20, %v858_v17 }
 0x103   :  { %360 = vst.msk [vmem:[#allocation13] sm:$0xff] %vm359_vm3, %v350_v21 }
 0x108   :  { %v452_v26 = vld [vmem:[#allocation2] sm:$0xff] }
 0x169   :  { %v433_v22 = vpop.f32.mrf.mxu1 }
 0x16a   :  { %v434_v23 = vadd.f32 %v433_v22, %v270_v16 }
 0x16b   :  { %v435_v9 = vpop.f32.mrf.mxu1 }
 0x16c   :  { %439 = vst.msk [vmem:[#allocation2 + $0x8] sm:$0xff] %vm352_vm2, %v434_v23  ;;  %441 = vrot.lane.b32.xlu1 %v434_v23, %s779_s12  ;;  %v436_v10 = vadd.f32 %v435_v9, %v858_v17 }
 0x173   :  { %v356_v24 = vpop.permute.xlu0 %355  ;;  %v479_v31 = vld [vmem:[#allocation2 + $0x8] sm:$0xff] }
 0x174   :  { %358 = vst.msk [vmem:[#allocation3] sm:$0xff] %vm352_vm2, %v356_v24 }
 0x17b   :  { %v453_v25 = vld [vmem:[#allocation3] sm:$0xff] }
 0x17c   :  { %v454_v27 = vmul.f32 %v453_v25, %v452_v26  ;;  %v472_v37 = vmul.f32 %v479_v31, %v453_v25 }
 0x17e   :  { %v455_v28 = vsel %vm352_vm2, %v454_v27, 0.0  ;;  %v473_v41 = vsel %vm352_vm2, %v472_v37, 0.0 }
 0x190   :  { %456 = vadd.xlane.f32.xlu1 %v455_v28 }
 0x1de   :  { %v442_v29 = vpop.permute.xlu1 %441 }
 0x1df   :  { %445 = vst.msk [vmem:[#allocation3 + $0x8] sm:$0xff] %vm352_vm2, %v442_v29 }
 0x1e6   :  { %v462_v30 = vld [vmem:[#allocation3 + $0x8] sm:$0xff] }
 0x1e7   :  { %v463_v32 = vmul.f32 %v462_v30, %v452_v26  ;;  %v481_v33 = vmul.f32 %v479_v31, %v462_v30 }
 0x1e9   :  { %v464_v35 = vsel %vm352_vm2, %v463_v32, 0.0  ;;  %v482_v36 = vsel %vm352_vm2, %v481_v33, 0.0 }
 0x1ea   :  { %465 = vadd.xlane.f32.xlu0 %v464_v35  ;;  %483 = vadd.xlane.f32.xlu1 %v482_v36 }
 0x1ee   :  { %474 = vadd.xlane.f32.xlu0 %v473_v41  ;;  %95 = vadd.xlane.f32.xlu1 %v94_v38 }
 0x1f2   :  { %101 = vadd.xlane.f32.xlu1 %v100_v42  ;;  %92 = vadd.xlane.f32.xlu0 %v91_v43 }
 0x1f6   :  { %107 = vadd.xlane.f32.xlu1 %v106_v46  ;;  %98 = vadd.xlane.f32.xlu0 %v97_v47 }
 0x1fa   :  { %113 = vadd.xlane.f32.xlu1 %v112_v50  ;;  %104 = vadd.xlane.f32.xlu0 %v103_v51 }
 0x1fe   :  { %127 = vadd.xlane.f32.xlu1 %v126_v54  ;;  %110 = vadd.xlane.f32.xlu0 %v109_v55 }
 0x202   :  { %133 = vadd.xlane.f32.xlu1 %v132_v58  ;;  %124 = vadd.xlane.f32.xlu0 %v123_v59 }
 0x206   :  { %139 = vadd.xlane.f32.xlu1 %v138_v62  ;;  %130 = vadd.xlane.f32.xlu0 %v129_v63 }
 0x20a   :  { %145 = vadd.xlane.f32.xlu1 %v144_v2  ;;  %136 = vadd.xlane.f32.xlu0 %v135_v3 }
 0x20e   :  { %142 = vadd.xlane.f32.xlu0 %v141_v6 }
 0x219   :  { %v457_v7 = vpop.xlane.xlu1 %456 }
 0x21a   :  { %v458_v8 = vmul.f32 0.125, %v457_v7 }
 0x21c   :  { %460 = vst.msk [vmem:[%s1054_s7] sm:$0xff] %vm459_vm5, %v458_v8 }
 0x224   :  { %447 = vrot.lane.b32.xlu0 %v436_v10, %s776_s29 }
 0x273   :  { %v466_v11 = vpop.xlane.xlu0 %465  ;;  %v484_v14 = vpop.xlane.xlu1 %483 }
 0x274   :  { %v467_v15 = vmul.f32 0.125, %v466_v11  ;;  %v485_v20 = vmul.f32 0.125, %v484_v14 }
 0x276   :  { %469 = vst.msk [vmem:[%s1054_s7] sm:$0xff] %vm468_vm6, %v467_v15 }
 0x277   :  { %v475_v16 = vpop.xlane.xlu0 %474  ;;  %v96_v18 = vpop.xlane.xlu1 %95 }
 0x278   :  { %v476_v19 = vmul.f32 0.125, %v475_v16  ;;  %v947_v28 = vmul.f32 0.0625, %v96_v18 }
 0x27a   :  { %478 = vst.msk [vmem:[%s1054_s7] sm:$0xff] %vm477_vm7, %v476_v19  ;;  %v164_v35 = vmul.f32 %v947_v28, %v947_v28 }
 0x27b   :  { %487 = vst.msk [vmem:[%s1054_s7] sm:$0xff] %vm486_vm8, %v485_v20  ;;  %v102_v17 = vpop.xlane.xlu1 %101  ;;  %v93_v21 = vpop.xlane.xlu0 %92 }
 0x27c   :  { %v949_v30 = vmul.f32 0.0625, %v102_v17  ;;  %v953_v36 = vmul.f32 0.0625, %v93_v21 }
 0x27e   :  { %v166_v42 = vmul.f32 %v949_v30, %v949_v30  ;;  %v163_v52 = vmul.f32 %v953_v36, %v953_v36 }
 0x27f   :  { %v108_v22 = vpop.xlane.xlu1 %107  ;;  %v99_v23 = vpop.xlane.xlu0 %98 }
 0x280   :  { %v957_v43 = vmul.f32 0.0625, %v108_v22  ;;  %v959_v46 = vmul.f32 0.0625, %v99_v23 }
 0x282   :  { %v943_v24 = vld [vmem:[%s1054_s7] sm:$0xff]  ;;  %v168_v62 = vmul.f32 %v957_v43, %v957_v43  ;;  %v165_v63 = vmul.f32 %v959_v46, %v959_v46  ;;  %s781_s7 = smov [#allocation13]  }
 0x283   :  { %v114_v25 = vpop.xlane.xlu1 %113  ;;  %v105_v26 = vpop.xlane.xlu0 %104  ;;  %v490_v27 = vsel %vm489_vm9, %v943_v24, -inf  ;;  %s549_s22 = sshll.u32 %s781_s7, 4  ;;  %s550_s22 = int_to_ptr.vmem [resolvable:$true] %s549_s22 }
 0x284   :  { %v491_v29 = vrot.slane %v490_v27, 4  ;;  %v963_v58 = vmul.f32 0.0625, %v114_v25  ;;  %v971_v0 = vmul.f32 0.0625, %v105_v26  ;;  %s699_s25 = scalar_lea.vmem %s550_s22, 128  ;;  %p704_p7 = scmp.lt.s32.totalorder %s550_s22, %s550_s22 }
 0x285   :  { %p700_p6 = scmp.ne.s32.totalorder %s550_s22, %s699_s25  ;;  %p705_p8 = scmp.lt.s32.totalorder %s699_s25, %s699_s25 }
 0x286   :  { %v492_v33 = vmax.f32 %v490_v27, %v491_v29  ;;  %v170_v9 = vmul.f32 %v963_v58, %v963_v58  ;;  %v167_v14 = vmul.f32 %v971_v0, %v971_v0 }
 0x287   :  { %v128_v31 = vpop.xlane.xlu1 %127  ;;  %v111_v32 = vpop.xlane.xlu0 %110  ;;  %p706_p9 = por %p705_p8, %p704_p7 }
 0x288   :  { %v156_v37 = vmul.f32 0.0625, %v128_v31  ;;  %v493_v38 = vrot.slane %v492_v33, 2  ;;  %v978_v15 = vmul.f32 0.0625, %v111_v32 }
 0x289   :  { %p707_p10 = pnand %p706_p9, %p700_p6 }
 0x28a   :  { %v172_v41 = vsub.f32 %v156_v37, %v164_v35  ;;  %v494_v51 = vmax.f32 %v492_v33, %v493_v38  ;;  %v169_v12 = vmul.f32 %v978_v15, %v978_v15  ;;  %v180_v33 = vsub.f32 %v866_v34, %v947_v28  ;;  %v992_v38 = vld [vmem:[%s1048_s1] ss:$0 sm:$0xff] }
 0x28b   :  { %v134_v47 = vpop.xlane.xlu1 %133  ;;  %v125_v50 = vpop.xlane.xlu0 %124 }
 0x28c   :  { %v188_v54 = vadd.f32 1e-05, %v172_v41  ;;  %v158_v55 = vmul.f32 0.0625, %v134_v47  ;;  %v155_v56 = vmul.f32 0.0625, %v125_v50  ;;  %v495_v57 = vrot.slane %v494_v51, 1 }
 0x28d   :  { %v994_v50 = vld [vmem:[#allocation7] ss:$0 sm:$0xff] }
 0x28e   :  { %599 = vrsqrt.f32 %v188_v54  ;;  %v174_v59 = vsub.f32 %v158_v55, %v166_v42  ;;  %v171_v60 = vsub.f32 %v155_v56, %v163_v52  ;;  %v496_v3 = vmax.f32 %v494_v51, %v495_v57 }
 0x28f   :  { %v140_v1 = vpop.xlane.xlu1 %139  ;;  %v131_v2 = vpop.xlane.xlu0 %130 }
 0x290   :  { %v190_v4 = vadd.f32 1e-05, %v174_v59  ;;  %v187_v5 = vadd.f32 1e-05, %v171_v60  ;;  %v160_v6 = vmul.f32 0.0625, %v140_v1  ;;  %v157_v7 = vmul.f32 0.0625, %v131_v2 }
 0x291   :  { %v505_v8 = vmax.f32 %v965_v61, %v496_v3 }
 0x292   :  { %601 = vrsqrt.f32 %v190_v4  ;;  %v176_v10 = vsub.f32 %v160_v6, %v168_v62  ;;  %v173_v11 = vsub.f32 %v157_v7, %v165_v63 }
 0x293   :  { %603 = vrsqrt.f32 %v187_v5  ;;  %v146_v16 = vpop.xlane.xlu1 %145  ;;  %v137_v18 = vpop.xlane.xlu0 %136  ;;  %v514_v19 = vrot.slane %v505_v8, %v269_v13  ;;  %528 = vst.msk [vmem:[#allocation15] sm:$0x1] %vm501_vm0, %v505_v8  ;;  %v507_v35 = vsub.f32 %v965_v61, %v505_v8 }
 0x294   :  { %v192_v20 = vadd.f32 1e-05, %v176_v10  ;;  %v189_v17 = vadd.f32 1e-05, %v173_v11  ;;  %v162_v21 = vmul.f32 0.0625, %v146_v16  ;;  %v159_v22 = vmul.f32 0.0625, %v137_v18 }
 0x295   :  { %v515_v23 = vsub.f32 %v943_v24, %v514_v19 }
 0x296   :  { %605 = vrsqrt.f32 %v192_v20  ;;  %v178_v25 = vsub.f32 %v162_v21, %v170_v9  ;;  %v175_v26 = vsub.f32 %v159_v22, %v167_v14 }
 0x297   :  { %607 = vrsqrt.f32 %v189_v17  ;;  %v143_v27 = vpop.xlane.xlu0 %142  ;;  %v516_v29 = vmul.f32 1.442695, %v515_v23 }
 0x298   :  { %v194_v13 = vadd.f32 1e-05, %v178_v25  ;;  %v191_v31 = vadd.f32 1e-05, %v175_v26  ;;  %v161_v32 = vmul.f32 0.0625, %v143_v27 }
 0x299   :  { %609 = vpow2.f32 %v516_v29 }
 0x29a   :  { %611 = vrsqrt.f32 %v194_v13  ;;  %v177_v24 = vsub.f32 %v161_v32, %v169_v12 }
 0x29b   :  { %v600_v37 = vpop.eup %599  ;;  %613 = vrsqrt.f32 %v191_v31  ;;  %v448_v41 = vpop.permute.xlu0 %447 }
 0x29c   :  { %v204_v42 = vmul.f32 %v600_v37, %v180_v33  ;;  %v193_v47 = vadd.f32 1e-05, %v177_v24  ;;  %451 = vst.msk [vmem:[#allocation13] sm:$0xff] %vm450_vm10, %v448_v41 }
 0x29d   :  { %710 = shalt.err (!%p707_p10)
}
 0x29e   :  { %552 = dma.vmem_to_hbm [thread:$0]  %s550_s22, 128, %s1055_s8, [#allocation14]   ;;  %v182_v34 = vsub.f32 %v872_v39, %v949_v30  ;;  %v218_v28 = vmul.f32 %v992_v38, %v204_v42  ;;  %615 = vrsqrt.f32 %v193_v47  ;;  %v508_v51 = vmul.f32 1.442695, %v507_v35  ;;  %v506_v12 = vld [vmem:[#allocation15 + $0x1] sm:$0x1] }
 0x29f   :  { %v602_v52 = vpop.eup %601  ;;  %v179_v54 = vsub.f32 %v874_v40, %v953_v36  ;;  %vm247_vm11 = vcmask 122880   ;;  %v184_v60 = vsub.f32 %v881_v44, %v957_v43  ;;  %v181_v62 = vsub.f32 %v883_v45, %v959_v46  ;;  %s782_s1 = smov [#allocation12]   ;;  %s783_s27 = smov [#allocation15]  }
 0x2a0   :  { %v604_v55 = vpop.eup %603  ;;  %v232_v56 = vadd.f32 %v994_v50, %v218_v28  ;;  %v206_v57 = vmul.f32 %v602_v52, %v182_v34  ;;  %617 = vpow2.f32 %v508_v51  ;;  %v186_v43 = vsub.f32 %v889_v48, %v963_v58  ;;  %s534_s8 = sshll.u32 %s782_s1, 4  ;;  %s559_s28 = sshll.u32 %s783_s27, 4  ;;  %s535_s8 = int_to_ptr.vmem [resolvable:$true] %s534_s8  ;;  %s560_s28 = int_to_ptr.vmem [resolvable:$true] %s559_s28 }
 0x2a1   :  { %v203_v59 = vmul.f32 %v604_v55, %v179_v54  ;;  %v183_v45 = vsub.f32 %v891_v49, %v971_v0  ;;  %v185_v49 = vsub.f32 %v899_v53, %v978_v15  ;;  %s719_s0 = scalar_lea.vmem %s535_s8, 128  ;;  %p724_p12 = scmp.lt.s32.totalorder %s535_s8, %s535_s8 }
 0x2a2   :  { %v240_v61 = vpack.c.bf16 %v232_v56, %v232_v56  ;;  %v220_v39 = vmul.f32 %v992_v38, %v206_v57  ;;  %p720_p11 = scmp.ne.s32.totalorder %s535_s8, %s719_s0  ;;  %p725_p13 = scmp.lt.s32.totalorder %s719_s0, %s719_s0 }
 0x2a3   :  { %v606_v30 = vpop.eup %605  ;;  %v217_v63 = vmul.f32 %v992_v38, %v203_v59 }
 0x2a4   :  { %v608_v40 = vpop.eup %607  ;;  %249 = vst.msk [vmem:[#allocation12 + $0x1] sm:$0x1] %vm247_vm11, %v240_v61  ;;  %v234_v36 = vadd.f32 %v994_v50, %v220_v39  ;;  %v208_v1 = vmul.f32 %v606_v30, %v184_v60  ;;  %p726_p0 = por %p725_p13, %p724_p12 }
 0x2a5   :  { %v231_v2 = vadd.f32 %v994_v50, %v217_v63  ;;  %v205_v3 = vmul.f32 %v608_v40, %v181_v62 }
 0x2a6   :  { %v610_v44 = vpop.eup %609  ;;  %v242_v4 = vpack.c.bf16 %v234_v36, %v234_v36  ;;  %v222_v5 = vmul.f32 %v992_v38, %v208_v1  ;;  %p727_p1 = pnand %p726_p0, %p720_p11 }
 0x2a7   :  { %v612_v6 = vpop.eup %611  ;;  %v239_v46 = vpack.c.bf16 %v231_v2, %v231_v2  ;;  %v219_v7 = vmul.f32 %v992_v38, %v205_v3  ;;  %v518_v8 = vsel %vm489_vm9, %v610_v44, 0.0 }
 0x2a8   :  { %v614_v9 = vpop.eup %613  ;;  %251 = vst.msk [vmem:[#allocation12 + $0x3] sm:$0x1] %vm247_vm11, %v242_v4  ;;  %v236_v10 = vadd.f32 %v994_v50, %v222_v5  ;;  %v210_v11 = vmul.f32 %v612_v6, %v186_v43  ;;  %v519_v14 = vrot.slane %v518_v8, 4 }
 0x2a9   :  { %248 = vst.msk [vmem:[#allocation12] sm:$0x1] %vm247_vm11, %v239_v46  ;;  %v233_v48 = vadd.f32 %v994_v50, %v219_v7  ;;  %v207_v58 = vmul.f32 %v614_v9, %v183_v45 }
 0x2aa   :  { %v244_v0 = vpack.c.bf16 %v236_v10, %v236_v10  ;;  %v224_v16 = vmul.f32 %v992_v38, %v210_v11  ;;  %v520_v18 = vadd.f32 %v519_v14, %v518_v8 }
 0x2ab   :  { %v616_v19 = vpop.eup %615  ;;  %v241_v20 = vpack.c.bf16 %v233_v48, %v233_v48  ;;  %v221_v17 = vmul.f32 %v992_v38, %v207_v58 }
 0x2ac   :  { %253 = vst.msk [vmem:[#allocation12 + $0x5] sm:$0x1] %vm247_vm11, %v244_v0  ;;  %v238_v21 = vadd.f32 %v994_v50, %v224_v16  ;;  %v209_v22 = vmul.f32 %v616_v19, %v185_v49  ;;  %v521_v23 = vrot.slane %v520_v18, 2 }
 0x2ad   :  { %250 = vst.msk [vmem:[#allocation12 + $0x2] sm:$0x1] %vm247_vm11, %v241_v20  ;;  %v235_v25 = vadd.f32 %v994_v50, %v221_v17  ;;  %v618_v27 = vpop.eup %617 }
 0x2ae   :  { %v246_v26 = vpack.c.bf16 %v238_v21, %v238_v21  ;;  %v223_v53 = vmul.f32 %v992_v38, %v209_v22  ;;  %v522_v15 = vadd.f32 %v521_v23, %v520_v18  ;;  %v510_v33 = vmul.f32 %v618_v27, %v506_v12 }
 0x2af   :  { %v243_v29 = vpack.c.bf16 %v235_v25, %v235_v25 }
 0x2b0   :  { %255 = vst.msk [vmem:[#allocation12 + $0x7] sm:$0x1] %vm247_vm11, %v246_v26  ;;  %v237_v13 = vadd.f32 %v994_v50, %v223_v53  ;;  %v523_v31 = vrot.slane %v522_v15, 1 }
 0x2b1   :  { %252 = vst.msk [vmem:[#allocation12 + $0x4] sm:$0x1] %vm247_vm11, %v243_v29 }
 0x2b2   :  { %v245_v32 = vpack.c.bf16 %v237_v13, %v237_v13  ;;  %v524_v24 = vadd.f32 %v523_v31, %v522_v15 }
 0x2b4   :  { %254 = vst.msk [vmem:[#allocation12 + $0x6] sm:$0x1] %vm247_vm11, %v245_v32  ;;  %v525_v35 = vadd.f32 %v524_v24, %v510_v33 }
 0x2b5   :  { %730 = shalt.err (!%p727_p1)
}
 0x2b6   :  { %s784_s30 = smov 1   ;;  %527 = vst.msk [vmem:[#allocation15 + $0x1] sm:$0x1] %vm501_vm0, %v525_v35  ;;  %s739_s4 = scalar_lea.vmem %s560_s28, 32 }
 0x2b7   :  { %540 = dma.vmem_to_hbm [thread:$0]  %s535_s8, 128, %s1053_s6, [#allocation6], %s776_s29, %s776_s29, %s784_s30  }
 0x2b8   :  { %p740_p2 = scmp.ne.s32.totalorder %s560_s28, %s739_s4  ;;  %p744_p3 = scmp.lt.s32.totalorder %s560_s28, %s560_s28 }
 0x2b9   :  { %p745_p4 = scmp.lt.s32.totalorder %s739_s4, %s739_s4 }
 0x2bb   :  { %p746_p5 = por %p745_p4, %p744_p3 }
 0x2bd   :  { %p747_p6 = pnand %p746_p5, %p740_p2 }
 0x2bf   :  { %750 = shalt.err (!%p747_p6)
}
 0x2c0   :  { %562 = dma.vmem_to_hbm [thread:$0]  %s560_s28, 32, %s1056_s9, [#allocation14]  }
 0x2c1   :  { %765 = dma.done.wait [#allocation6], 128  }
 0x2c2   :  { %766 = vsyncadd [#allocation6], 4294967168 }
 0x2c3   :  { %767 = dma.done.wait [#allocation14], 160  }
 0x2c4   :  { %768 = vsyncadd [#allocation14], 4294967136 }
 0x2c5   :  { %574 = vsyncpa [#allocation5], 1 }
 0x2c6   :  { %575 = vsyncpa [#allocation8], 1 }
 0x2c7   :  { %576 = vsyncpa [#allocation11], 1 }
 0x2c8   :  { %577 = vsyncpa [#allocation6], 1 }
 0x2c9   :  { %578 = vsyncpa [#allocation14], 1 }

</bundles_post_ra>
